<compile_context>
chip_gen: v7x
topology: tpu7x:2x2x1
jax: 0.10.0
libtpu: 0.0.40
codegen_flags: <defaults>
</compile_context>

<pallas_src>
import functools

import jax
import jax.numpy as jnp
from jax.experimental import pallas as pl
from jax.experimental.pallas import tpu as pltpu

_LANES = 128          # TPU lane width; padded output width
_H1, _H2, _H3 = 256, 128, 16


def _round_up(n, m):
    return ((n + m - 1) // m) * m


def _tpu_generation():
    """Best-effort TPU generation from device_kind (v7x -> 7, v6e -> 6, v5e -> 5, ...)."""
    try:
        kind = jax.devices()[0].device_kind.lower()
    except Exception:
        return 6
    for g in (7, 6, 5, 4, 3, 2):
        if f"v{g}" in kind:
            return g
    return 6


# ----------------------------------------------------------------------------- kernels
def _trunk(x_ref, w1, w2, b2, w3, b3, *, elem_dtype):
    """layer1..layer3 (+ReLU). Returns bf16 [TILE_B, 128]; lanes >= 16 are exactly 0."""
    x = x_ref[...]                                                     # bf16, ones column appended
    # layer1: bias folded into w1 (last row), so no elementwise add here.
    h = jnp.dot(x, w1[...], preferred_element_type=jnp.float32)
    h = jnp.maximum(h.astype(elem_dtype), 0.0).astype(jnp.bfloat16)
    # layer2
    h = jnp.dot(h, w2[...], preferred_element_type=jnp.float32)
    h = jnp.maximum(h.astype(elem_dtype) + b2[...].astype(elem_dtype), 0.0).astype(jnp.bfloat16)
    # layer3 (fan-out padded to 128 lanes; padded weight cols / bias lanes are 0)
    h = jnp.dot(h, w3[...], preferred_element_type=jnp.float32)
    h = jnp.maximum(h.astype(elem_dtype) + b3[...].astype(elem_dtype), 0.0).astype(jnp.bfloat16)
    return h


def _sde_actor_kernel(x_ref, w1, w2, b2, w3, b3, out_ref, *, elem_dtype):
    # 'sde_actor' returns the (lane-padded) layer3 activations directly.
    out_ref[...] = _trunk(x_ref, w1, w2, b2, w3, b3,
                          elem_dtype=elem_dtype).astype(out_ref.dtype)


def _head_kernel(x_ref, w1, w2, b2, w3, b3, w4, b4, out_ref, *, model, elem_dtype):
    h = _trunk(x_ref, w1, w2, b2, w3, b3, elem_dtype=elem_dtype)
    # layer4: h's padded lanes are 0 and w4's padded K rows are 0 -> result unchanged.
    y = jnp.dot(h, w4[...], preferred_element_type=jnp.float32) + b4[...]
    if model == "actor":
        # Padded lanes of the actor-only b4 carry -1e30, so they vanish from the softmax
        # (exp underflows to 0) with no per-step masking cost.
        m = jnp.max(y, axis=-1, keepdims=True)
        e = jnp.exp(y - m)
        y = e * pl.reciprocal(jnp.sum(e, axis=-1, keepdims=True), approx=True)
    out_ref[...] = y.astype(out_ref.dtype)


# ----------------------------------------------------------------------------- wrapper
def mlp_policy_forward(x, packed, model, out_dim, *, tile_b=4096):
    """Forward pass of MLPPolicy.

    x:       [batch, in_dim] float32
    packed:  dict from pack_params() (bf16 weights with lane padding; layer-1 bias folded)
    model:   'actor' | 'sde_actor' | anything else ('critic')
    out_dim: real (unpadded) output dimension of layer4
    """
    batch, in_dim = x.shape
    gen = _tpu_generation()
    num_cores = 2 if gen >= 7 else 1
    vmem_cap = (48 << 20) if gen >= 7 else (64 << 20)
    elem_dtype = packed["b2"].dtype       # bf16 on v6e/v7x, f32 on v5e (set at pack time)

    # Append the ones column for the folded layer-1 bias and hand bf16 to the kernel.
    x = jnp.concatenate([x, jnp.ones((batch, 1), x.dtype)], axis=1).astype(jnp.bfloat16)
    in_w = in_dim + 1

    # --- batch tiling -----------------------------------------------------------------
    tile_b = max(8, _round_up(min(tile_b, _round_up(batch, 8)), 8))
    if num_cores > 1 and batch > 8:
        # Ensure >= 2 grid steps so the 'parallel' axis uses both TensorCores on v7x.
        tile_b = min(tile_b, max(8, _round_up((batch + num_cores - 1) // num_cores, 8)))

    if model == "sde_actor":
        kernel = functools.partial(_sde_actor_kernel, elem_dtype=elem_dtype)
        names = ("w1", "w2", "b2", "w3", "b3")       # no w4/b4 DMA for sde_actor
        real_out = _H3
    else:
        b4_name = "b4_actor" if model == "actor" else "b4"
        kernel = functools.partial(_head_kernel, model=model, elem_dtype=elem_dtype)
        names = ("w1", "w2", "b2", "w3", "b3", "w4", b4_name)
        real_out = out_dim
    operands = tuple(packed[n] for n in names)
    weight_bytes = sum(int(a.size) * a.dtype.itemsize for a in operands)

    # Honest per-row VMEM estimate: double-buffered bf16 x/out tiles, f32 MXU accumulators
    # plus bf16 activation copies for layers 1-3, and f32 y/exp/softmax temporaries.
    per_row = (2 * in_w * 2            # x tile, bf16, double-buffered
               + 2 * _LANES * 2        # out tile, bf16, double-buffered
               + _H1 * (4 + 2)         # layer1 acc (f32) + bf16 activation
               + 2 * _H2 * (4 + 2)     # layers 2-3 acc (f32) + bf16 activation
               + 3 * _LANES * 4)       # layer4 y / exp / normalized (f32)
    while tile_b > 8 and 2 * weight_bytes + tile_b * per_row > (3 * vmem_cap) // 4:
        tile_b = max(8, _round_up(tile_b // 2, 8))

    padded_batch = _round_up(batch, tile_b)
    if padded_batch != batch:
        x = jnp.pad(x, ((0, padded_batch - batch), (0, 0)))
    grid = (padded_batch // tile_b,)

    need = 2 * weight_bytes + tile_b * per_row
    vmem_limit = int(min(max(need + need // 2, 8 << 20), vmem_cap))

    x_spec = pl.BlockSpec((tile_b, in_w), lambda i: (i, 0))
    out_spec = pl.BlockSpec((tile_b, _LANES), lambda i: (i, 0))

    def const_spec(a):  # full array, constant block index -> resident across the grid
        return pl.BlockSpec(a.shape, lambda i: (0, 0))

    out_padded = pl.pallas_call(
        kernel,
        out_shape=jax.ShapeDtypeStruct((padded_batch, _LANES), jnp.bfloat16),
        grid=grid,
        in_specs=[x_spec] + [const_spec(a) for a in operands],
        out_specs=out_spec,
        compiler_params=pltpu.CompilerParams(
            dimension_semantics=("parallel",),            # megacore on v7x
            vmem_limit_bytes=vmem_limit),
    )(x, *operands)

    # Slice off the batch padding and the lane padding; return f32 like the torch module.
    return out_padded[:batch, :real_out].astype(jnp.float32)


# ----------------------------------------------------------------------------- params
def init_params(key, in_dim, out_dim):
    """PyTorch-nn.Linear-like init (uniform +-1/sqrt(fan_in)), f32.

    Weights stored as [fan_in, fan_out] (transposed vs torch), biases as [1, fan_out]."""
    dims = [(in_dim, _H1), (_H1, _H2), (_H2, _H3), (_H3, out_dim)]
    params = {}
    for i, (fi, fo) in enumerate(dims, start=1):
        key, kw, kb = jax.random.split(key, 3)
        bound = 1.0 / (fi ** 0.5)
        params[f"w{i}"] = jax.random.uniform(kw, (fi, fo), jnp.float32, -bound, bound)
        params[f"b{i}"] = jax.random.uniform(kb, (1, fo), jnp.float32, -bound, bound)
    return params


def pack_params(params, elem_dtype=None):
    """Kernel-ready params.

    * weights -> bf16; narrow fan-out dims zero-padded to 128 lanes
      (w3: [128,16]->[128,128], w4: [16,out]->[128,128]; zero rows/cols keep math exact)
    * layer-1 bias folded into w1 as an extra row (x gets a ones column in the wrapper)
    * b2/b3 stored in the elementwise compute dtype (bf16 on v6e/v7x, f32 on v5e)
    * b4 kept in f32; an actor-only 'b4_actor' carries -1e30 in the padded lanes so the
      kernel needs no per-step softmax mask."""
    if elem_dtype is None:
        elem_dtype = jnp.bfloat16 if _tpu_generation() >= 6 else jnp.float32
    out_dim = params["w4"].shape[1]
    assert out_dim <= _LANES, "out_dim > 128 would need an extra output tile"

    def pad2(a, rows, cols):
        return jnp.pad(a, ((0, rows - a.shape[0]), (0, cols - a.shape[1])))

    w1_aug = jnp.concatenate([params["w1"], params["b1"]], axis=0)      # bias as last row
    b4 = pad2(params["b4"], 1, _LANES).astype(jnp.float32)
    lane = jnp.arange(_LANES)[None, :]
    b4_actor = jnp.where(lane < out_dim, b4, jnp.float32(-1e30))

    return {
        "w1": w1_aug.astype(jnp.bfloat16),
        "w2": params["w2"].astype(jnp.bfloat16),
        "b2": params["b2"].astype(elem_dtype),
        "w3": pad2(params["w3"], _H2, _LANES).astype(jnp.bfloat16),
        "b3": pad2(params["b3"], 1, _LANES).astype(elem_dtype),
        "w4": pad2(params["w4"], _LANES, _LANES).astype(jnp.bfloat16),
        "b4": b4,
        "b4_actor": b4_actor,
    }


def mlp_policy_reference(x, params, model):
    """Pure-JAX f32 reference matching the PyTorch forward."""
    h = jax.nn.relu(x @ params["w1"] + params["b1"])
    h = jax.nn.relu(h @ params["w2"] + params["b2"])
    h = jax.nn.relu(h @ params["w3"] + params["b3"])
    if model == "sde_actor":
        return h
    y = h @ params["w4"] + params["b4"]
    if model == "actor":
        return jax.nn.softmax(y, axis=-1)
    return y


# ----------------------------------------------------------------------------- test
if __name__ == "__main__":
    key = jax.random.PRNGKey(0)
    in_dim, out_dim = 8, 4

    kp, kx1, kx2 = jax.random.split(key, 3)
    params = init_params(kp, in_dim, out_dim)   # f32 reference params
    packed = pack_params(params)                # bf16 / lane-padded / bias-folded params

    # small batch (exercises padding to the 8-row sublane minimum)
    x_small = jax.random.normal(kx1, (2, in_dim), jnp.float32)
    # larger batch (exercises the batch grid / megacore split on v7x)
    x_big = jax.random.normal(kx2, (2048, in_dim), jnp.float32)

    ok = True
    for x in (x_small, x_big):
        for model in ("actor", "critic", "sde_actor"):
            out = jax.block_until_ready(mlp_policy_forward(x, packed, model, out_dim))
            ref = mlp_policy_reference(x, params, model)
            # Loose tolerance: kernel uses bf16 matmuls/weights (f32 accum), bf16 output
            # and an approx EUP reciprocal; the reference is full f32.
            if out.shape != ref.shape or not jnp.allclose(out, ref, atol=2e-2, rtol=2e-2):
                ok = False

    if ok:
        print("KERNEL_OK")
</pallas_src>

<mosaic_0001>
module attributes {stable_mosaic.version = 11 : i64} {
  func.func @_head_kernel(%arg0: i32, %arg1: memref<8x9xbf16, #tpu.memory_space<vmem>>, %arg2: memref<9x256xbf16, #tpu.memory_space<vmem>>, %arg3: memref<256x128xbf16, #tpu.memory_space<vmem>>, %arg4: memref<1x128xbf16, #tpu.memory_space<vmem>>, %arg5: memref<128x128xbf16, #tpu.memory_space<vmem>>, %arg6: memref<1x128xbf16, #tpu.memory_space<vmem>>, %arg7: memref<128x128xbf16, #tpu.memory_space<vmem>>, %arg8: memref<1x128xf32, #tpu.memory_space<vmem>>, %arg9: memref<8x128xbf16, #tpu.memory_space<vmem>>) attributes {dimension_semantics = [#tpu.dimension_semantics<parallel>], iteration_bounds = array<i64: 1>, scalar_prefetch = 0 : i64, scratch_operands = 0 : i64, tpu.core_type = #tpu.core_type<tc>, window_params = [{transform_indices = @transform_0, window_bounds = array<i64: 8, 9>}, {pipeline_mode = #tpu.pipeline_mode<synchronous>, transform_indices = @transform_1, window_bounds = array<i64: 9, 256>}, {pipeline_mode = #tpu.pipeline_mode<synchronous>, transform_indices = @transform_2, window_bounds = array<i64: 256, 128>}, {pipeline_mode = #tpu.pipeline_mode<synchronous>, transform_indices = @transform_3, window_bounds = array<i64: 1, 128>}, {pipeline_mode = #tpu.pipeline_mode<synchronous>, transform_indices = @transform_4, window_bounds = array<i64: 128, 128>}, {pipeline_mode = #tpu.pipeline_mode<synchronous>, transform_indices = @transform_5, window_bounds = array<i64: 1, 128>}, {pipeline_mode = #tpu.pipeline_mode<synchronous>, transform_indices = @transform_6, window_bounds = array<i64: 128, 128>}, {pipeline_mode = #tpu.pipeline_mode<synchronous>, transform_indices = @transform_7, window_bounds = array<i64: 1, 128>}, {transform_indices = @transform_8, window_bounds = array<i64: 8, 128>}]} {
    %c0 = arith.constant 0 : index
    %c0_0 = arith.constant 0 : index
    %0 = vector.load %arg1[%c0, %c0_0] : memref<8x9xbf16, #tpu.memory_space<vmem>>, vector<8x9xbf16>
    %c0_1 = arith.constant 0 : index
    %c0_2 = arith.constant 0 : index
    %1 = vector.load %arg2[%c0_1, %c0_2] : memref<9x256xbf16, #tpu.memory_space<vmem>>, vector<9x256xbf16>
    %cst = arith.constant dense<0.000000e+00> : vector<8x256xf32>
    %2 = tpu.matmul %0, %1, %cst {dimension_numbers = #tpu.dot_dimension_numbers<[1], [0], [0], [1], [0, 0, 1, 1], [], []>} : vector<8x9xbf16>, vector<9x256xbf16>, vector<8x256xf32> -> vector<8x256xf32>
    %3 = arith.truncf %2 : vector<8x256xf32> to vector<8x256xbf16>
    %cst_3 = arith.constant 0.000000e+00 : bf16
    %4 = vector.broadcast %cst_3 : bf16 to vector<8x256xbf16>
    %5 = arith.maximumf %3, %4 : vector<8x256xbf16>
    %c0_4 = arith.constant 0 : index
    %c0_5 = arith.constant 0 : index
    %6 = vector.load %arg3[%c0_4, %c0_5] : memref<256x128xbf16, #tpu.memory_space<vmem>>, vector<256x128xbf16>
    %cst_6 = arith.constant dense<0.000000e+00> : vector<8x128xf32>
    %7 = tpu.matmul %5, %6, %cst_6 {dimension_numbers = #tpu.dot_dimension_numbers<[1], [0], [0], [1], [0, 0, 1, 1], [], []>} : vector<8x256xbf16>, vector<256x128xbf16>, vector<8x128xf32> -> vector<8x128xf32>
    %8 = arith.truncf %7 : vector<8x128xf32> to vector<8x128xbf16>
    %c0_7 = arith.constant 0 : index
    %c0_8 = arith.constant 0 : index
    %9 = vector.load %arg4[%c0_7, %c0_8] : memref<1x128xbf16, #tpu.memory_space<vmem>>, vector<1x128xbf16>
    %10 = vector.broadcast %9 : vector<1x128xbf16> to vector<8x128xbf16>
    %11 = arith.addf %8, %10 : vector<8x128xbf16>
    %cst_9 = arith.constant 0.000000e+00 : bf16
    %12 = vector.broadcast %cst_9 : bf16 to vector<8x128xbf16>
    %13 = arith.maximumf %11, %12 : vector<8x128xbf16>
    %c0_10 = arith.constant 0 : index
    %c0_11 = arith.constant 0 : index
    %14 = vector.load %arg5[%c0_10, %c0_11] : memref<128x128xbf16, #tpu.memory_space<vmem>>, vector<128x128xbf16>
    %cst_12 = arith.constant dense<0.000000e+00> : vector<8x128xf32>
    %15 = tpu.matmul %13, %14, %cst_12 {dimension_numbers = #tpu.dot_dimension_numbers<[1], [0], [0], [1], [0, 0, 1, 1], [], []>} : vector<8x128xbf16>, vector<128x128xbf16>, vector<8x128xf32> -> vector<8x128xf32>
    %16 = arith.truncf %15 : vector<8x128xf32> to vector<8x128xbf16>
    %c0_13 = arith.constant 0 : index
    %c0_14 = arith.constant 0 : index
    %17 = vector.load %arg6[%c0_13, %c0_14] : memref<1x128xbf16, #tpu.memory_space<vmem>>, vector<1x128xbf16>
    %18 = vector.broadcast %17 : vector<1x128xbf16> to vector<8x128xbf16>
    %19 = arith.addf %16, %18 : vector<8x128xbf16>
    %cst_15 = arith.constant 0.000000e+00 : bf16
    %20 = vector.broadcast %cst_15 : bf16 to vector<8x128xbf16>
    %21 = arith.maximumf %19, %20 : vector<8x128xbf16>
    %c0_16 = arith.constant 0 : index
    %c0_17 = arith.constant 0 : index
    %22 = vector.load %arg7[%c0_16, %c0_17] : memref<128x128xbf16, #tpu.memory_space<vmem>>, vector<128x128xbf16>
    %cst_18 = arith.constant dense<0.000000e+00> : vector<8x128xf32>
    %23 = tpu.matmul %21, %22, %cst_18 {dimension_numbers = #tpu.dot_dimension_numbers<[1], [0], [0], [1], [0, 0, 1, 1], [], []>} : vector<8x128xbf16>, vector<128x128xbf16>, vector<8x128xf32> -> vector<8x128xf32>
    %c0_19 = arith.constant 0 : index
    %c0_20 = arith.constant 0 : index
    %24 = vector.load %arg8[%c0_19, %c0_20] : memref<1x128xf32, #tpu.memory_space<vmem>>, vector<1x128xf32>
    %25 = vector.broadcast %24 : vector<1x128xf32> to vector<8x128xf32>
    %26 = arith.addf %23, %25 : vector<8x128xf32>
    %cst_21 = arith.constant dense<0xFF800000> : vector<8xf32>
    %27 = vector.multi_reduction <maximumf>, %26, %cst_21 [1] : vector<8x128xf32> to vector<8xf32>
    %28 = vector.shape_cast %27 : vector<8xf32> to vector<8x1xf32>
    %29 = vector.broadcast %28 : vector<8x1xf32> to vector<8x128xf32>
    %30 = arith.subf %26, %29 : vector<8x128xf32>
    %31 = math.exp %30 : vector<8x128xf32>
    %cst_22 = arith.constant dense<0.000000e+00> : vector<8xf32>
    %32 = vector.multi_reduction <add>, %31, %cst_22 [1] : vector<8x128xf32> to vector<8xf32>
    %33 = vector.shape_cast %32 : vector<8xf32> to vector<8x1xf32>
    %34 = tpu.reciprocal %33 {approx = true} : vector<8x1xf32> -> vector<8x1xf32>
    %35 = vector.broadcast %34 : vector<8x1xf32> to vector<8x128xf32>
    %36 = arith.mulf %31, %35 : vector<8x128xf32>
    %37 = arith.truncf %36 : vector<8x128xf32> to vector<8x128xbf16>
    %c0_23 = arith.constant 0 : index
    %c0_24 = arith.constant 0 : index
    %38 = vector.load %arg9[%c0_23, %c0_24] : memref<8x128xbf16, #tpu.memory_space<vmem>>, vector<8x128xbf16>
    tpu.vector_store %arg9[%c0_23, %c0_24], %37 {strides = array<i32>} : memref<8x128xbf16, #tpu.memory_space<vmem>>, vector<8x128xbf16>,
    return
  }
  func.func @transform_0(%arg0: i32) -> (i32, i32) {
    %c0_i32 = arith.constant 0 : i32
    %c0_i32_0 = arith.constant 0 : i32
    return %arg0, %c0_i32 : i32, i32
  }
  func.func @transform_1(%arg0: i32) -> (i32, i32) {
    %c0_i32 = arith.constant 0 : i32
    %c0_i32_0 = arith.constant 0 : i32
    %c0_i32_1 = arith.constant 0 : i32
    return %c0_i32, %c0_i32_0 : i32, i32
  }
  func.func @transform_2(%arg0: i32) -> (i32, i32) {
    %c0_i32 = arith.constant 0 : i32
    %c0_i32_0 = arith.constant 0 : i32
    %c0_i32_1 = arith.constant 0 : i32
    return %c0_i32, %c0_i32_0 : i32, i32
  }
  func.func @transform_3(%arg0: i32) -> (i32, i32) {
    %c0_i32 = arith.constant 0 : i32
    %c0_i32_0 = arith.constant 0 : i32
    %c0_i32_1 = arith.constant 0 : i32
    return %c0_i32, %c0_i32_0 : i32, i32
  }
  func.func @transform_4(%arg0: i32) -> (i32, i32) {
    %c0_i32 = arith.constant 0 : i32
    %c0_i32_0 = arith.constant 0 : i32
    %c0_i32_1 = arith.constant 0 : i32
    return %c0_i32, %c0_i32_0 : i32, i32
  }
  func.func @transform_5(%arg0: i32) -> (i32, i32) {
    %c0_i32 = arith.constant 0 : i32
    %c0_i32_0 = arith.constant 0 : i32
    %c0_i32_1 = arith.constant 0 : i32
    return %c0_i32, %c0_i32_0 : i32, i32
  }
  func.func @transform_6(%arg0: i32) -> (i32, i32) {
    %c0_i32 = arith.constant 0 : i32
    %c0_i32_0 = arith.constant 0 : i32
    %c0_i32_1 = arith.constant 0 : i32
    return %c0_i32, %c0_i32_0 : i32, i32
  }
  func.func @transform_7(%arg0: i32) -> (i32, i32) {
    %c0_i32 = arith.constant 0 : i32
    %c0_i32_0 = arith.constant 0 : i32
    %c0_i32_1 = arith.constant 0 : i32
    return %c0_i32, %c0_i32_0 : i32, i32
  }
  func.func @transform_8(%arg0: i32) -> (i32, i32) {
    %c0_i32 = arith.constant 0 : i32
    %c0_i32_0 = arith.constant 0 : i32
    return %arg0, %c0_i32 : i32, i32
  }
}

</mosaic_0001>

<bundles_post_ra>
// kernel: tpu_custom_call.1
= control target key start
LH: loop header
LB: loop body
LE: loop exit
PB: predicated region body
PF: predicated region fallthrough
CT: control target
= control target key end

     0   :  { %13 = vsyncpa [#allocation3], 0  ;;  %s1081_s0 = inlined_call_operand.hbm [shape: bf16[8,9], index: 0, kind: input, shape index: {}]   ;;  %s1082_s1 = inlined_call_operand.hbm [shape: bf16[9,256], index: 1, kind: input, shape index: {}]   ;;  %s1083_s2 = inlined_call_operand.hbm [shape: bf16[256,128], index: 2, kind: input, shape index: {}]   ;;  %s1084_s3 = inlined_call_operand.vmem [shape: bf16[1,128], index: 3, kind: input, shape index: {}]   ;;  %s1085_s4 = inlined_call_operand.hbm [shape: bf16[128,128], index: 4, kind: input, shape index: {}]   ;;  %s1086_s5 = inlined_call_operand.vmem [shape: bf16[1,128], index: 5, kind: input, shape index: {}]   ;;  %s1087_s6 = inlined_call_operand.hbm [shape: bf16[128,128], index: 6, kind: input, shape index: {}]   ;;  %s1088_s7 = inlined_call_operand.vmem [shape: f32[1,128], index: 7, kind: input, shape index: {}]   ;;  %s1089_s8 = inlined_call_operand.hbm [shape: bf16[8,128], index: 8, kind: output, shape index: {}]  }
   0x1   :  { %14 = vsyncpa [#allocation6], 0 }
   0x2   :  { %15 = vsyncpa [#allocation9], 0 }
   0x3   :  { %16 = vsyncpa [#allocation4], 0  ;;  %s909_s27 = smov [#allocation5]   ;;  %s769_s9 = scalar_lea.hbm %s1082_s1, 256 }
   0x4   :  { %s32_s28 = sshll.u32 %s909_s27, 4  ;;  %p770_p0 = scmp.ne.s32.totalorder %s1082_s1, %s769_s9  ;;  %s33_s28 = int_to_ptr.vmem [resolvable:$true] %s32_s28 }
   0x5   :  { %p773_p1 = scmp.lt.u32.totalorder %s769_s9, %s1082_s1 }
   0x7   :  { %p775_p2 = pnand %p773_p1, %p770_p0 }
   0x9   :  { %778 = shalt.err (!%p775_p2)
}
   0xa   :  { %s779_s14 = scalar_lea.vmem %s33_s28, 256  ;;  %p784_p4 = scmp.lt.s32.totalorder %s33_s28, %s33_s28 }
   0xb   :  { %p780_p3 = scmp.ne.s32.totalorder %s33_s28, %s779_s14  ;;  %p785_p5 = scmp.lt.s32.totalorder %s779_s14, %s779_s14 }
   0xd   :  { %p786_p6 = por %p785_p5, %p784_p4 }
   0xf   :  { %p787_p7 = pnand %p786_p6, %p780_p3 }
  0x11   :  { %790 = shalt.err (!%p787_p7)
}
  0x12   :  { %s910_s15 = smov 128   ;;  %s911_s16 = smov 8  }
  0x13   :  { %38 = dma.hbm_to_vmem [thread:$0]  %s1082_s1, 256, %s33_s28, [#allocation6], %s910_s15, %s910_s15, %s911_s16  }
  0x14   :  { %s912_s19 = smov [#allocation8]   ;;  %s913_s21 = smov [#allocation2]  }
  0x15   :  { %s58_s20 = sshll.u32 %s912_s19, 4  ;;  %s23_s22 = sshll.u32 %s913_s21, 4  ;;  %s59_s20 = int_to_ptr.vmem [resolvable:$true] %s58_s20  ;;  %s24_s22 = int_to_ptr.vmem [resolvable:$true] %s23_s22 }
  0x16   :  { %s791_s25 = scalar_lea.hbm %s1085_s4, 1024 }
  0x17   :  { %p792_p8 = scmp.ne.s32.totalorder %s1085_s4, %s791_s25  ;;  %p795_p9 = scmp.lt.u32.totalorder %s791_s25, %s1085_s4 }
  0x19   :  { %p797_p10 = pnand %p795_p9, %p792_p8 }
  0x1b   :  { %800 = shalt.err (!%p797_p10)
}
  0x1c   :  { %s801_s1 = scalar_lea.vmem %s59_s20, 1024  ;;  %p806_p12 = scmp.lt.s32.totalorder %s59_s20, %s59_s20 }
  0x1d   :  { %p802_p11 = scmp.ne.s32.totalorder %s59_s20, %s801_s1  ;;  %p807_p13 = scmp.lt.s32.totalorder %s801_s1, %s801_s1 }
  0x1f   :  { %p808_p0 = por %p807_p13, %p806_p12 }
  0x21   :  { %p809_p1 = pnand %p808_p0, %p802_p11 }
  0x23   :  { %812 = shalt.err (!%p809_p1)
}
  0x24   :  { %s914_s28 = smov 64   ;;  %s915_s9 = smov 4  }
  0x25   :  { %64 = dma.hbm_to_vmem [thread:$0]  %s1085_s4, 1024, %s59_s20, [#allocation9], %s914_s28, %s914_s28, %s915_s9  }
  0x26   :  { %s813_s14 = scalar_lea.hbm %s1081_s0, 64 }
  0x27   :  { %p814_p2 = scmp.ne.s32.totalorder %s1081_s0, %s813_s14  ;;  %p817_p3 = scmp.lt.u32.totalorder %s813_s14, %s1081_s0 }
  0x29   :  { %p819_p4 = pnand %p817_p3, %p814_p2 }
  0x2b   :  { %822 = shalt.err (!%p819_p4)
}
  0x2c   :  { %s823_s19 = scalar_lea.vmem %s24_s22, 64  ;;  %p828_p6 = scmp.lt.s32.totalorder %s24_s22, %s24_s22 }
  0x2d   :  { %p824_p5 = scmp.ne.s32.totalorder %s24_s22, %s823_s19  ;;  %p829_p7 = scmp.lt.s32.totalorder %s823_s19, %s823_s19 }
  0x2f   :  { %p830_p8 = por %p829_p7, %p828_p6 }
  0x31   :  { %p831_p9 = pnand %p830_p8, %p824_p5 }
  0x33   :  { %834 = shalt.err (!%p831_p9)
}
  0x34   :  { %26 = dma.hbm_to_vmem [thread:$0]  %s1081_s0, 64, %s24_s22, [#allocation3]  }
  0x35   :  { %s916_s21 = smov [#allocation7]   ;;  %s917_s24 = smov [#allocation10]  }
  0x36   :  { %s44_s23 = sshll.u32 %s916_s21, 4  ;;  %s72_s25 = sshll.u32 %s917_s24, 4  ;;  %s45_s23 = int_to_ptr.vmem [resolvable:$true] %s44_s23  ;;  %s73_s25 = int_to_ptr.vmem [resolvable:$true] %s72_s25 }
  0x37   :  { %s835_s29 = scalar_lea.hbm %s1083_s2, 2048 }
  0x38   :  { %p836_p10 = scmp.ne.s32.totalorder %s1083_s2, %s835_s29  ;;  %p839_p11 = scmp.lt.u32.totalorder %s835_s29, %s1083_s2 }
  0x3a   :  { %p841_p12 = pnand %p839_p11, %p836_p10 }
  0x3c   :  { %844 = shalt.err (!%p841_p12)
}
  0x3d   :  { %s845_s0 = scalar_lea.vmem %s45_s23, 2048  ;;  %p850_p0 = scmp.lt.s32.totalorder %s45_s23, %s45_s23 }
  0x3e   :  { %p846_p13 = scmp.ne.s32.totalorder %s45_s23, %s845_s0  ;;  %p851_p1 = scmp.lt.s32.totalorder %s845_s0, %s845_s0 }
  0x40   :  { %p852_p2 = por %p851_p1, %p850_p0 }
  0x42   :  { %p853_p3 = pnand %p852_p2, %p846_p13 }
  0x44   :  { %856 = shalt.err (!%p853_p3)
}
  0x45   :  { %50 = dma.hbm_to_vmem [thread:$0]  %s1083_s2, 2048, %s45_s23, [#allocation6], %s914_s28, %s914_s28, %s915_s9  }
  0x46   :  { %s857_s15 = scalar_lea.hbm %s1087_s6, 1024 }
  0x47   :  { %p858_p4 = scmp.ne.s32.totalorder %s1087_s6, %s857_s15  ;;  %p861_p5 = scmp.lt.u32.totalorder %s857_s15, %s1087_s6 }
  0x49   :  { %p863_p6 = pnand %p861_p5, %p858_p4 }
  0x4b   :  { %866 = shalt.err (!%p863_p6)
}
  0x4c   :  { %s867_s4 = scalar_lea.vmem %s73_s25, 1024  ;;  %p872_p8 = scmp.lt.s32.totalorder %s73_s25, %s73_s25 }
  0x4d   :  { %p868_p7 = scmp.ne.s32.totalorder %s73_s25, %s867_s4  ;;  %p873_p9 = scmp.lt.s32.totalorder %s867_s4, %s867_s4 }
  0x4f   :  { %p874_p10 = por %p873_p9, %p872_p8 }
  0x51   :  { %p875_p11 = pnand %p874_p10, %p868_p7 }
  0x53   :  { %878 = shalt.err (!%p875_p11)
}
  0x54   :  { %78 = dma.hbm_to_vmem [thread:$0]  %s1087_s6, 1024, %s73_s25, [#allocation9], %s914_s28, %s914_s28, %s915_s9  }
  0x55   :  { %901 = dma.done.wait [#allocation3], 64  }
  0x56   :  { %902 = vsyncadd [#allocation3], 4294967232 }
  0x57   :  { %903 = dma.done.wait [#allocation6], 2304  }
  0x58   :  { %904 = vsyncadd [#allocation6], 4294964992 }
  0x59   :  { %905 = dma.done.wait [#allocation9], 2048  }
  0x5a   :  { %906 = vsyncadd [#allocation9], 4294965248  ;;  %vm112_vm0 = vcmask 1043456   ;;  %v918_v0 = vmov 0   ;;  %vm113_vm1 = vcmask 1044480   ;;  %v919_v1 = vmov 65535  }
  0x5b   :  { %154 = vmatprep.mubr.bf16.mxu0 %v918_v0  ;;  %v114_v2 = vsel %vm112_vm0, 4294967295, %v919_v1  ;;  %v730_v4 = vld [vmem:[#allocation5 + $0x4] ss:$8 sps:$4 sm:$0x1f]   ;;  %v733_v6 = vld [vmem:[#allocation7 + $0x40] sm:$0xff]   ;;  %v735_v11 = vld [vmem:[#allocation7 + $0x48] sm:$0xff]   ;;  %v340_v48 = vlaneseq }
  0x5c   :  { %v115_v3 = vsel %vm113_vm1, %v114_v2, 0  ;;  %v732_v5 = vld [vmem:[#allocation5] ss:$8 sps:$4 sm:$0x1f]   ;;  %v97_v9 = vld [vmem:[#allocation2] sm:$0xf]  ;;  %636 = vmatprep.subr.bf16.mxu1 %v733_v6 }
  0x5d   :  { %v120_v7 = vand.u32 %v730_v4, %v115_v3  ;;  %v117_v8 = vand.u32 %v732_v5, %v115_v3  ;;  %v734_v10 = vld [vmem:[#allocation7] sm:$0xff]   ;;  %vm108_vm2 = vcmask 72704   ;;  %v736_v12 = vld [vmem:[#allocation7 + $0x8] sm:$0xff]   ;;  %v737_v13 = vld [vmem:[#allocation7 + $0x50] sm:$0xff]   ;;  %v920_v26 = vmov 0.0  }
  0x5e   :  { %637 = vmatpush3.bf16.msra.mxu1 %v734_v10  ;;  %v738_v14 = vld [vmem:[#allocation7 + $0x10] sm:$0xff]   ;;  %v739_v15 = vld [vmem:[#allocation7 + $0x58] sm:$0xff]   ;;  %v741_v17 = vld [vmem:[#allocation7 + $0x60] sm:$0xff]   ;;  %vm921_vm3 = vmmov 0   ;;  %v341_v49 = vshrl.u32 %v340_v48, 7 }
  0x5f   :  { %122 = vmatprep.subr.bf16.mxu0 %v120_v7  ;;  %638 = vmatprep.subr.bf16.mxu1 %v735_v11  ;;  %v740_v16 = vld [vmem:[#allocation7 + $0x18] sm:$0xff]   ;;  %v742_v18 = vld [vmem:[#allocation7 + $0x20] sm:$0xff]   ;;  %v743_v19 = vld [vmem:[#allocation7 + $0x68] sm:$0xff]  }
  0x60   :  { %123 = vmatpush1.bf16.msra.mxu0 %v117_v8  ;;  %v744_v20 = vld [vmem:[#allocation7 + $0x28] sm:$0xff]   ;;  %v745_v21 = vld [vmem:[#allocation7 + $0x70] sm:$0xff]   ;;  %v747_v23 = vld [vmem:[#allocation7 + $0x78] sm:$0xff]   ;;  %v342_v52 = vsub.s32 0, %v341_v49 }
  0x61   :  { %v746_v22 = vld [vmem:[#allocation7 + $0x30] sm:$0xff]   ;;  %v748_v24 = vld [vmem:[#allocation7 + $0x38] sm:$0xff]   ;;  %v749_v25 = vld [vmem:[#allocation8] sm:$0xff]   ;;  %676 = vmatprep.subr.bf16.mxu0 %v920_v26 }
  0x62   :  { %639 = vmatpush3.bf16.msra.mxu1 %v736_v12  ;;  %v750_v27 = vld [vmem:[#allocation8 + $0x8] sm:$0xff]   ;;  %v751_v28 = vld [vmem:[#allocation8 + $0x10] sm:$0xff]   ;;  %v752_v29 = vld [vmem:[#allocation8 + $0x18] sm:$0xff]  }
  0x63   :  { %602 = vmatmul.mubr.msk.bf16.vlgmr.msra.gmra.mrb[0].mxu0 %vm108_vm2, %v97_v9  ;;  %640 = vmatprep.subr.bf16.mxu1 %v737_v13  ;;  %v753_v30 = vld [vmem:[#allocation8 + $0x20] sm:$0xff]   ;;  %v754_v31 = vld [vmem:[#allocation8 + $0x28] sm:$0xff]   ;;  %v755_v40 = vld [vmem:[#allocation8 + $0x30] sm:$0xff]  }
  0x64   :  { %677 = vmatpush3.bf16.msra.mxu0 %v749_v25  ;;  %v756_v41 = vld [vmem:[#allocation8 + $0x38] sm:$0xff]   ;;  %692 = vmatprep.mubr.msk.bf16.mxu0 %vm921_vm3, %v920_v26  ;;  %v757_v42 = vld [vmem:[#allocation10] sm:$0xff]   ;;  %v758_v43 = vld [vmem:[#allocation10 + $0x8] sm:$0xff]  }
  0x65   :  { %678 = vmatprep.subr.bf16.mxu0 %v920_v26  ;;  %v759_v44 = vld [vmem:[#allocation10 + $0x10] sm:$0xff]   ;;  %v760_v45 = vld [vmem:[#allocation10 + $0x18] sm:$0xff]   ;;  %v761_v46 = vld [vmem:[#allocation10 + $0x20] sm:$0xff]  }
  0x66   :  { %641 = vmatpush3.bf16.msra.mxu1 %v738_v14  ;;  %v762_v47 = vld [vmem:[#allocation10 + $0x28] sm:$0xff]   ;;  %v763_v62 = vld [vmem:[#allocation10 + $0x30] sm:$0xff]   ;;  %v764_v63 = vld [vmem:[#allocation10 + $0x38] sm:$0xff]  }
  0x67   :  { %642 = vmatprep.subr.bf16.mxu1 %v739_v15  ;;  %v336_v50 = vld [vmem:[%s1084_s3] sm:$0x1] }
  0x68   :  { %679 = vmatpush3.bf16.msra.mxu0 %v750_v27  ;;  %v338_v51 = vpack.i.b16 %v336_v50, %v336_v50  ;;  %v451_v1 = vld [vmem:[%s1086_s5] sm:$0x1]  ;;  %s922_s5 = smov [#allocation11]  }
  0x69   :  { %680 = vmatprep.subr.bf16.mxu0 %v920_v26  ;;  %v453_v2 = vpack.i.b16 %v451_v1, %v451_v1  ;;  %v627_v11 = vld [vmem:[%s1088_s7] ss:$0 sm:$0xff]  ;;  %s589_s24 = sshll.u32 %s922_s5, 4  ;;  %s590_s24 = int_to_ptr.vmem [resolvable:$true] %s589_s24 }
  0x6a   :  { %643 = vmatpush3.bf16.msra.mxu1 %v740_v16  ;;  %v343_v56 = vrot.slane %v338_v51, %v342_v52  ;;  %s879_s7 = scalar_lea.vmem %s590_s24, 64  ;;  %p884_p13 = scmp.lt.s32.totalorder %s590_s24, %s590_s24 }
  0x6b   :  { %644 = vmatprep.subr.bf16.mxu1 %v741_v17  ;;  %v458_v3 = vrot.slane %v453_v2, %v342_v52  ;;  %p880_p12 = scmp.ne.s32.totalorder %s590_s24, %s879_s7  ;;  %p885_p0 = scmp.lt.s32.totalorder %s879_s7, %s879_s7 }
  0x6c   :  { %681 = vmatpush3.bf16.msra.mxu0 %v751_v28 }
  0x6d   :  { %682 = vmatprep.subr.bf16.mxu0 %v920_v26  ;;  %p886_p1 = por %p885_p0, %p884_p13 }
  0x6e   :  { %645 = vmatpush3.bf16.msra.mxu1 %v742_v18 }
  0x6f   :  { %646 = vmatprep.subr.bf16.mxu1 %v743_v19  ;;  %p887_p2 = pnand %p886_p1, %p880_p12 }
  0x70   :  { %683 = vmatpush3.bf16.msra.mxu0 %v752_v29 }
  0x71   :  { %684 = vmatprep.subr.bf16.mxu0 %v920_v26 }
  0x72   :  { %647 = vmatpush3.bf16.msra.mxu1 %v744_v20 }
  0x73   :  { %648 = vmatprep.subr.bf16.mxu1 %v745_v21 }
  0x74   :  { %685 = vmatpush3.bf16.msra.mxu0 %v753_v30 }
  0x75   :  { %686 = vmatprep.subr.bf16.mxu0 %v920_v26 }
  0x76   :  { %649 = vmatpush3.bf16.msra.mxu1 %v746_v22 }
  0x77   :  { %650 = vmatprep.subr.bf16.mxu1 %v747_v23 }
  0x78   :  { %687 = vmatpush3.bf16.msra.mxu0 %v754_v31 }
  0x79   :  { %688 = vmatprep.subr.bf16.mxu0 %v920_v26 }
  0x7a   :  { %651 = vmatpush3.bf16.msra.mxu1 %v748_v24 }
  0x7b   :  { %696 = vmatprep.subr.bf16.mxu1 %v920_v26 }
  0x7c   :  { %689 = vmatpush3.bf16.msra.mxu0 %v755_v40 }
  0x7d   :  { %690 = vmatprep.subr.bf16.mxu0 %v920_v26 }
  0x80   :  { %691 = vmatpush3.bf16.msra.mxu0 %v756_v41 }
 0x136   :  { %v156_v32 = vpop.f32.mrb[0].mxu0 }
 0x137   :  { %v163_v33 = vpack.c.bf16 %v156_v32, %v156_v32  ;;  %v158_v34 = vpop.f32.mrb[1].mxu0 }
 0x138   :  { %v164_v35 = vpack.c.bf16 %v158_v34, %v158_v34  ;;  %v160_v36 = vpop.f32.mrb[2].mxu0 }
 0x139   :  { %v161_v37 = vpop.f32.mrb[3].mxu0  ;;  %v165_v39 = vmax.bf16 %v918_v0, %v163_v33 }
 0x13a   :  { %v166_v38 = vmax.bf16 %v918_v0, %v164_v35 }
 0x13c   :  { %327 = vmatprep.mubr.bf16.mxu1 %v166_v38 }
 0x13d   :  { %328 = vmatmul.mubr.bf16.vlgmr.msra.gmra.mrb[0].mxu1 %v165_v39 }
 0x13e   :  { %712 = vmatprep.mubr.msk.bf16.mxu1 %vm921_vm3, %v920_v26  ;;  %697 = vmatpush3.bf16.msra.mxu1 %v757_v42 }
 0x13f   :  { %698 = vmatprep.subr.bf16.mxu1 %v920_v26 }
 0x142   :  { %699 = vmatpush3.bf16.msra.mxu1 %v758_v43 }
 0x143   :  { %700 = vmatprep.subr.bf16.mxu1 %v920_v26 }
 0x146   :  { %701 = vmatpush3.bf16.msra.mxu1 %v759_v44 }
 0x147   :  { %702 = vmatprep.subr.bf16.mxu1 %v920_v26 }
 0x14a   :  { %703 = vmatpush3.bf16.msra.mxu1 %v760_v45 }
 0x14b   :  { %704 = vmatprep.subr.bf16.mxu1 %v920_v26 }
 0x14e   :  { %705 = vmatpush3.bf16.msra.mxu1 %v761_v46 }
 0x14f   :  { %706 = vmatprep.subr.bf16.mxu1 %v920_v26 }
 0x152   :  { %707 = vmatpush3.bf16.msra.mxu1 %v762_v47 }
 0x153   :  { %708 = vmatprep.subr.bf16.mxu1 %v920_v26 }
 0x156   :  { %709 = vmatpush3.bf16.msra.mxu1 %v763_v62 }
 0x157   :  { %710 = vmatprep.subr.bf16.mxu1 %v920_v26 }
 0x15a   :  { %711 = vmatpush3.bf16.msra.mxu1 %v764_v63 }
 0x210   :  { %v652_v53 = vpop.f32.mrb[0].mxu1 }
 0x211   :  { %v653_v54 = vpop.f32.mrb[1].mxu1 }
 0x212   :  { %v654_v55 = vadd.f32 %v653_v54, %v652_v53  ;;  %v655_v57 = vpop.f32.mrb[2].mxu1 }
 0x213   :  { %v656_v58 = vpop.f32.mrb[3].mxu1 }
 0x214   :  { %v335_v59 = vpack.c.bf16 %v654_v55, %v654_v55 }
 0x216   :  { %v344_v60 = vadd.bf16 %v343_v56, %v335_v59 }
 0x218   :  { %v345_v61 = vmax.bf16 %v918_v0, %v344_v60 }
 0x21a   :  { %693 = vmatmul.mubr.bf16.vlgmr.msra.gmra.mrb[4].mxu0 %v345_v61 }
 0x2ed   :  { %v444_v4 = vpop.f32.mrb[4].mxu0 }
 0x2ee   :  { %v450_v5 = vpack.c.bf16 %v444_v4, %v444_v4  ;;  %v694_v6 = vpop.f32.mrb[5].mxu0 }
 0x2ef   :  { %v447_v7 = vpop.f32.mrb[6].mxu0 }
 0x2f0   :  { %v459_v8 = vadd.bf16 %v458_v3, %v450_v5  ;;  %v695_v9 = vpop.f32.mrb[7].mxu0 }
 0x2f2   :  { %v460_v10 = vmax.bf16 %v918_v0, %v459_v8 }
 0x2f4   :  { %713 = vmatmul.mubr.bf16.vlgmr.msra.gmra.mrb[4].mxu1 %v460_v10 }
 0x3c7   :  { %v566_v12 = vpop.f32.mrb[4].mxu1 }
 0x3c8   :  { %v567_v13 = vadd.f32 %v627_v11, %v566_v12  ;;  %v714_v14 = vpop.f32.mrb[5].mxu1 }
 0x3c9   :  { %v569_v15 = vpop.f32.mrb[6].mxu1 }
 0x3ca   :  { %572 = vmax.xlane.f32.xlu0 %v567_v13  ;;  %v715_v16 = vpop.f32.mrb[7].mxu1 }
 0x457   :  { %v573_v17 = vpop.xlane.xlu0 %572 }
 0x458   :  { %v574_v18 = vsub.f32 %v567_v13, %v573_v17 }
 0x45a   :  { %v575_v19 = vmul.f32 1.442695, %v574_v18 }
 0x45c   :  { %765 = vpow2.f32 %v575_v19 }
 0x466   :  { %v766_v20 = vpop.eup %765 }
 0x467   :  { %577 = vadd.xlane.f32.xlu0 %v766_v20 }
 0x4f4   :  { %v578_v21 = vpop.xlane.xlu0 %577 }
 0x4f5   :  { %767 = vrcp.f32 %v578_v21 }
 0x4ff   :  { %v768_v0 = vpop.eup %767 }
 0x500   :  { %v580_v22 = vmul.f32 %v768_v0, %v766_v20 }
 0x502   :  { %v581_v23 = vpack.c.bf16 %v580_v22, %v580_v22 }
 0x504   :  { %582 = vst [vmem:[#allocation11] sm:$0xf] %v581_v23 }
 0x505   :  { %890 = shalt.err (!%p887_p2)
}
 0x506   :  { %s891_s27 = scalar_lea.hbm %s1089_s8, 64 }
 0x507   :  { %p892_p3 = scmp.ne.s32.totalorder %s1089_s8, %s891_s27  ;;  %p895_p4 = scmp.lt.u32.totalorder %s891_s27, %s1089_s8 }
 0x509   :  { %p897_p5 = pnand %p895_p4, %p892_p3 }
 0x50b   :  { %900 = shalt.err (!%p897_p5)
}
 0x50c   :  { %592 = dma.vmem_to_hbm [thread:$0]  %s590_s24, 64, %s1089_s8, [#allocation4]  }
 0x50d   :  { %907 = dma.done.wait [#allocation4], 64  }
 0x50e   :  { %908 = vsyncadd [#allocation4], 4294967232 }
 0x50f   :  { %596 = vsyncpa [#allocation3], 1 }
 0x510   :  { %597 = vsyncpa [#allocation6], 1 }
 0x511   :  { %598 = vsyncpa [#allocation9], 1 }
 0x512   :  { %599 = vsyncpa [#allocation4], 1 }

</bundles_post_ra>
